<compile_context>
chip_gen: v7x
topology: tpu7x:2x2x1
jax: 0.10.0
libtpu: 0.0.40
codegen_flags: <defaults>
</compile_context>

<pallas_src>
import jax
import jax.numpy as jnp
from jax.experimental import pallas as pl
from jax.experimental.pallas import tpu as pltpu


# ----------------------------------------------------------------------------
# Preferred path: the identity is free.  No custom call, no copy.
# ----------------------------------------------------------------------------
def identity(x: jax.Array) -> jax.Array:
    """y = x.  Returns the input directly (no pallas_call, no data movement)."""
    return x


# ----------------------------------------------------------------------------
# Materializing path: direct HBM->HBM DMA copy (no VMEM round trip, no grid).
# ----------------------------------------------------------------------------
_MAX_DMA_CHUNKS = 8                      # concurrent DMA descriptors for big arrays
_CHUNK_THRESHOLD_BYTES = 8 * 1024 * 1024  # only split arrays >= 8 MiB


def _chunk_bounds(lead: int, n_chunks: int):
    """Split `lead` rows into n_chunks contiguous, nearly equal static pieces."""
    base, rem = divmod(lead, n_chunks)
    bounds, start = [], 0
    for c in range(n_chunks):
        size = base + (1 if c < rem else 0)
        bounds.append((start, size))
        start += size
    return tuple(bounds)


def _make_dma_copy_kernel(bounds):
    """Kernel factory: issue one HBM->HBM DMA per (static) chunk, wait on all."""
    whole_array = len(bounds) == 1 and bounds[0] is None

    def kernel(x_hbm, o_hbm, sems):
        copies = []
        if whole_array:
            cp = pltpu.make_async_copy(x_hbm, o_hbm, sems.at[0])
            cp.start()
            copies.append(cp)
        else:
            for c, (start, size) in enumerate(bounds):
                cp = pltpu.make_async_copy(
                    x_hbm.at[pl.ds(start, size)],
                    o_hbm.at[pl.ds(start, size)],
                    sems.at[c],
                )
                cp.start()          # all chunk DMAs kept in flight concurrently
                copies.append(cp)
        for cp in copies:
            cp.wait()

    return kernel


def identity_copy(x: jax.Array) -> jax.Array:
    """y = x as a fresh HBM buffer, copied at DMA roofline (2N bytes total)."""
    itemsize = jnp.dtype(x.dtype).itemsize
    nbytes = x.size * itemsize
    lead = x.shape[0] if x.ndim >= 1 else 0

    if x.ndim >= 1 and lead >= 2 and nbytes >= _CHUNK_THRESHOLD_BYTES:
        n_chunks = min(_MAX_DMA_CHUNKS, lead)
        bounds = _chunk_bounds(lead, n_chunks)
    else:
        n_chunks = 1
        bounds = (None,)  # single whole-array DMA

    return pl.pallas_call(
        _make_dma_copy_kernel(bounds),
        out_shape=jax.ShapeDtypeStruct(x.shape, x.dtype),
        in_specs=[pl.BlockSpec(memory_space=pl.ANY)],   # stay in HBM, no auto-DMA
        out_specs=pl.BlockSpec(memory_space=pl.ANY),    # output filled by DMA only
        scratch_shapes=[pltpu.SemaphoreType.DMA((n_chunks,))],
    )(x)


if __name__ == "__main__":
    key = jax.random.PRNGKey(0)

    # Primary test: NCHW input matching the PyTorch module's typical use.
    shape = (2, 4, 16, 16)
    x = jax.random.normal(key, shape, dtype=jnp.float32)

    # Preferred path: free identity.
    y = identity(x)
    jax.block_until_ready(y)
    assert y.shape == shape and y.dtype == jnp.float32
    assert bool(jnp.array_equal(y, x))

    # Materializing path: direct HBM->HBM DMA copy (single descriptor).
    y2 = identity_copy(x)
    jax.block_until_ready(y2)
    assert y2.shape == shape and y2.dtype == jnp.float32
    assert bool(jnp.array_equal(y2, x))

    # Ragged / non-512-multiple size: no padding or slicing copies anywhere.
    x_odd = jax.random.normal(jax.random.PRNGKey(1), (5, 7, 9), dtype=jnp.float32)
    y_odd = identity_copy(x_odd)
    jax.block_until_ready(y_odd)
    assert bool(jnp.array_equal(y_odd, x_odd))

    # Large array: exercises the multi-chunk concurrent-DMA branch (8 MiB f32).
    x_big = jax.random.normal(jax.random.PRNGKey(2), (16, 512, 256), dtype=jnp.float32)
    y_big = identity_copy(x_big)
    jax.block_until_ready(y_big)
    assert bool(jnp.array_equal(y_big, x_big))

    print("KERNEL_OK")
</pallas_src>

<mosaic_0001>
module attributes {stable_mosaic.version = 11 : i64} {
  func.func @kernel(%arg0: memref<2x4x16x16xf32, #tpu.memory_space<any>>, %arg1: memref<2x4x16x16xf32, #tpu.memory_space<any>>, %arg2: memref<1x!tpu.dma_semaphore, #tpu.memory_space<semaphore_mem>>) attributes {dimension_semantics = [], scalar_prefetch = 0 : i64, scratch_operands = 1 : i64, tpu.core_type = #tpu.core_type<tc>} {
    %c0_i32 = arith.constant 0 : i32
    %0 = tpu.memref_slice %arg2[%c0_i32] : memref<1x!tpu.dma_semaphore, #tpu.memory_space<semaphore_mem>> -> memref<1x!tpu.dma_semaphore, #tpu.memory_space<semaphore_mem>>
    %1 = tpu.memref_squeeze %0 : memref<1x!tpu.dma_semaphore, #tpu.memory_space<semaphore_mem>> -> memref<!tpu.dma_semaphore, #tpu.memory_space<semaphore_mem>>
    tpu.enqueue_dma source(%arg0 : memref<2x4x16x16xf32, #tpu.memory_space<any>>) target(%arg1 : memref<2x4x16x16xf32, #tpu.memory_space<any>>) target_semaphore(%1 : memref<!tpu.dma_semaphore, #tpu.memory_space<semaphore_mem>>)
    %c0_i32_0 = arith.constant 0 : i32
    %2 = tpu.memref_slice %arg2[%c0_i32_0] : memref<1x!tpu.dma_semaphore, #tpu.memory_space<semaphore_mem>> -> memref<1x!tpu.dma_semaphore, #tpu.memory_space<semaphore_mem>>
    %3 = tpu.memref_squeeze %2 : memref<1x!tpu.dma_semaphore, #tpu.memory_space<semaphore_mem>> -> memref<!tpu.dma_semaphore, #tpu.memory_space<semaphore_mem>>
    tpu.wait_dma2 semaphore(%3 : memref<!tpu.dma_semaphore, #tpu.memory_space<semaphore_mem>>) src(%arg0 : memref<2x4x16x16xf32, #tpu.memory_space<any>>) dst(%arg1 : memref<2x4x16x16xf32, #tpu.memory_space<any>>)
    return
  }
}

</mosaic_0001>

<bundles_post_ra>
// kernel: tpu_custom_call.1
= control target key start
LH: loop header
LB: loop body
LE: loop exit
PB: predicated region body
PF: predicated region fallthrough
CT: control target
= control target key end

     0   :  { %s36_s6 = smov [#allocation2]   ;;  %s37_s7 = smov [#allocation3]   ;;  %s55_s0 = inlined_call_operand.hbm [shape: f32[2,4,16,16], index: 0, kind: input, shape index: {}]   ;;  %s56_s1 = inlined_call_operand.hbm [shape: f32[2,4,16,16], index: 1, kind: output, shape index: {}]  }
   0x1   :  { %s38_s8 = smov 0  }
   0x2   :  { %18 = dma.general %s55_s0, 2048, %s56_s1, %s36_s6, %s37_s7, [#allocation4], %s38_s8, 0  }
   0x3   :  { %34 = dma.done.wait [#allocation2], 2048 }
   0x4   :  { %35 = vsyncadd [#allocation2], 4294965248 }
   0x5   :  { %24 = vsyncmov [#allocation2] }
   0x8   :  { %s25_s13 = vpop.sfrf %24 }
   0x9   :  { %p30_p0 = scmp.ne.s32.totalorder %s25_s13, 0 }
   0xb   :  { %29 = shalt.err (%p30_p0)  }

</bundles_post_ra>
